<compile_context>
chip_gen: v7x
topology: tpu7x:2x2x1
jax: 0.10.0
libtpu: 0.0.40
codegen_flags: <defaults>
</compile_context>

<pallas_src>
import jax
import jax.numpy as jnp
from jax.experimental import pallas as pl
from jax.experimental.pallas import tpu as pltpu

_LN_EPS = 1e-5


def _round_up(n, m):
    return ((n + m - 1) // m) * m


def _make_fused_kernel(layer_cfgs):
    """Build the fused forward kernel.

    layer_cfgs: tuple of (apply_ln, apply_relu, f_in_true) per layer (static).
    Kernel refs: x_ref, then per-layer [gamma, beta]? , W, b, then out_ref.
    Invariant: padded feature lanes of the activation are always exactly zero
    (input is zero-padded; gamma/beta/bias/W are zero-padded), so lane-axis
    sums only see the true features.
    """

    def kernel(*refs):
        x_ref = refs[0]
        o_ref = refs[-1]
        p = 1
        x = x_ref[...].astype(jnp.float32)
        for (apply_ln, apply_relu, f_in) in layer_cfgs:
            if apply_ln:
                gamma = refs[p][...]
                beta = refs[p + 1][...]
                p += 2
                # Biased variance over the f_in true features only (padded
                # lanes of x are zero, so plain sums are already correct for
                # the mean; mask the centered term for the variance).
                lane = jax.lax.broadcasted_iota(jnp.int32, x.shape, 1)
                valid = lane < f_in
                mean = jnp.sum(x, axis=-1, keepdims=True) * (1.0 / f_in)
                centered = jnp.where(valid, x - mean, 0.0)
                var = jnp.sum(centered * centered, axis=-1, keepdims=True) * (1.0 / f_in)
                x = centered * jax.lax.rsqrt(var + _LN_EPS)
                x = x * gamma + beta  # zero-padded gamma/beta keep padded lanes at 0
            w = refs[p][...]
            b = refs[p + 1][...]
            p += 2
            x = jnp.dot(x, w, preferred_element_type=jnp.float32) + b
            if apply_relu:
                x = jnp.maximum(x, 0.0)
        o_ref[...] = x.astype(o_ref.dtype)

    return kernel


def init_ffnn_params(key, n_input_features, n_output_features, n_layers, layer_width):
    """nn.Linear default init (U(-1/sqrt(fan_in), +1/sqrt(fan_in))), LayerNorm
    default (gamma=1, beta=0). Weights stored pre-transposed as (in, out)."""
    in_widths = [n_input_features] + [layer_width] * (n_layers - 1)
    out_widths = [layer_width] * (n_layers - 1) + [n_output_features]
    params = []
    for i in range(n_layers):
        key, kw, kb = jax.random.split(key, 3)
        bound = 1.0 / (in_widths[i] ** 0.5)
        W = jax.random.uniform(kw, (in_widths[i], out_widths[i]),
                               jnp.float32, -bound, bound)
        b = jax.random.uniform(kb, (1, out_widths[i]),
                               jnp.float32, -bound, bound)
        gamma = jnp.ones((1, in_widths[i]), jnp.float32)
        beta = jnp.zeros((1, in_widths[i]), jnp.float32)
        params.append((gamma, beta, W, b))
    return params


def ffnn_forward(x, params, *, use_layer_norm=True,
                 apply_layer_norm_first_layer=True):
    """Mirror of FFNNModel.forward: flatten non-batch dims, run the fused kernel."""
    x = jnp.asarray(x, jnp.float32).reshape(x.shape[0], -1)
    B, F0 = x.shape
    n_layers = len(params)

    in_true = [params[i][2].shape[0] for i in range(n_layers)]
    out_true = [params[i][2].shape[1] for i in range(n_layers)]
    assert in_true[0] == F0
    # Lane-dense padded widths (multiples of 128).
    in_pad = [_round_up(f, 128) for f in in_true]
    out_pad = [_round_up(f, 128) for f in out_true]

    # Sublane-aligned batch tiling; "parallel" grid over batch tiles.
    TB = min(_round_up(B, 8), 256)
    B_pad = _round_up(B, TB)

    x_p = jnp.zeros((B_pad, in_pad[0]), jnp.float32).at[:B, :F0].set(x)

    layer_cfgs = []
    operands = [x_p]
    in_specs = [pl.BlockSpec((TB, in_pad[0]), lambda i: (i, 0))]
    for li, (gamma, beta, W, b) in enumerate(params):
        fi, fo = in_true[li], out_true[li]
        fip, fop = in_pad[li], out_pad[li]
        apply_ln = use_layer_norm and (li != 0 or apply_layer_norm_first_layer)
        apply_relu = li != n_layers - 1
        layer_cfgs.append((apply_ln, apply_relu, fi))
        if apply_ln:
            g_p = jnp.zeros((1, fip), jnp.float32).at[:, :fi].set(gamma.reshape(1, fi))
            bt_p = jnp.zeros((1, fip), jnp.float32).at[:, :fi].set(beta.reshape(1, fi))
            operands += [g_p, bt_p]
            in_specs += [pl.BlockSpec((1, fip), lambda i: (0, 0)),
                         pl.BlockSpec((1, fip), lambda i: (0, 0))]
        W_p = jnp.zeros((fip, fop), jnp.float32).at[:fi, :fo].set(W)
        b_p = jnp.zeros((1, fop), jnp.float32).at[:, :fo].set(b.reshape(1, fo))
        operands += [W_p, b_p]
        in_specs += [pl.BlockSpec((fip, fop), lambda i: (0, 0)),  # resident across grid
                     pl.BlockSpec((1, fop), lambda i: (0, 0))]

    kernel = _make_fused_kernel(tuple(layer_cfgs))
    # TODO(synk): for very large layer_width/batch, re-tile the matmuls and set
    # pltpu.CompilerParams(vmem_limit_bytes=...) for v7x's 64 MiB VMEM; at these
    # shapes the full-resident weights are a few hundred KB and fit everywhere.
    out = pl.pallas_call(
        kernel,
        out_shape=jax.ShapeDtypeStruct((B_pad, out_pad[-1]), jnp.float32),
        grid=(B_pad // TB,),
        in_specs=in_specs,
        out_specs=pl.BlockSpec((TB, out_pad[-1]), lambda i: (i, 0)),
        compiler_params=pltpu.CompilerParams(
            dimension_semantics=("parallel",)),
    )(*operands)
    return out[:B, :out_true[-1]]


def _ffnn_reference(x, params, *, use_layer_norm=True,
                    apply_layer_norm_first_layer=True):
    """Pure-JAX reference mirroring the PyTorch module."""
    x = jnp.asarray(x, jnp.float32).reshape(x.shape[0], -1)
    n_layers = len(params)
    for i, (gamma, beta, W, b) in enumerate(params):
        apply_ln = use_layer_norm and (i != 0 or apply_layer_norm_first_layer)
        if apply_ln:
            mean = jnp.mean(x, axis=-1, keepdims=True)
            var = jnp.mean((x - mean) ** 2, axis=-1, keepdims=True)
            x = (x - mean) * jax.lax.rsqrt(var + _LN_EPS) * gamma + beta
        x = x @ W + b
        if i != n_layers - 1:
            x = jnp.maximum(x, 0.0)
    return x


if __name__ == "__main__":
    # Config consistent with the module: n_input_features=32, n_output_features=8,
    # n_layers=3, layer_width=32, use_layer_norm=True,
    # apply_layer_norm_first_layer=True, act_fn=ReLU, output_act_fn=None.
    key = jax.random.PRNGKey(0)
    key, k_x = jax.random.split(key)

    batch = 2
    x = jax.random.normal(k_x, (batch, 4, 8), jnp.float32)  # flattens to (2, 32)

    params = init_ffnn_params(key,
                              n_input_features=32,
                              n_output_features=8,
                              n_layers=3,
                              layer_width=32)

    out = ffnn_forward(x, params,
                       use_layer_norm=True,
                       apply_layer_norm_first_layer=True)
    out = jax.block_until_ready(out)
    assert out.shape == (batch, 8), out.shape

    ref = _ffnn_reference(x, params,
                          use_layer_norm=True,
                          apply_layer_norm_first_layer=True)
    assert jnp.allclose(out, ref, atol=1e-4, rtol=1e-4), \
        float(jnp.max(jnp.abs(out - ref)))
    print("KERNEL_OK")
</pallas_src>

<mosaic_0001>
module attributes {stable_mosaic.version = 11 : i64} {
  func.func @kernel(%arg0: i32, %arg1: memref<8x128xf32, #tpu.memory_space<vmem>>, %arg2: memref<1x128xf32, #tpu.memory_space<vmem>>, %arg3: memref<1x128xf32, #tpu.memory_space<vmem>>, %arg4: memref<128x128xf32, #tpu.memory_space<vmem>>, %arg5: memref<1x128xf32, #tpu.memory_space<vmem>>, %arg6: memref<1x128xf32, #tpu.memory_space<vmem>>, %arg7: memref<1x128xf32, #tpu.memory_space<vmem>>, %arg8: memref<128x128xf32, #tpu.memory_space<vmem>>, %arg9: memref<1x128xf32, #tpu.memory_space<vmem>>, %arg10: memref<1x128xf32, #tpu.memory_space<vmem>>, %arg11: memref<1x128xf32, #tpu.memory_space<vmem>>, %arg12: memref<128x128xf32, #tpu.memory_space<vmem>>, %arg13: memref<1x128xf32, #tpu.memory_space<vmem>>, %arg14: memref<8x128xf32, #tpu.memory_space<vmem>>) attributes {dimension_semantics = [#tpu.dimension_semantics<parallel>], iteration_bounds = array<i64: 1>, scalar_prefetch = 0 : i64, scratch_operands = 0 : i64, tpu.core_type = #tpu.core_type<tc>, window_params = [{transform_indices = @transform_0, window_bounds = array<i64: 8, 128>}, {pipeline_mode = #tpu.pipeline_mode<synchronous>, transform_indices = @transform_1, window_bounds = array<i64: 1, 128>}, {pipeline_mode = #tpu.pipeline_mode<synchronous>, transform_indices = @transform_2, window_bounds = array<i64: 1, 128>}, {pipeline_mode = #tpu.pipeline_mode<synchronous>, transform_indices = @transform_3, window_bounds = array<i64: 128, 128>}, {pipeline_mode = #tpu.pipeline_mode<synchronous>, transform_indices = @transform_4, window_bounds = array<i64: 1, 128>}, {pipeline_mode = #tpu.pipeline_mode<synchronous>, transform_indices = @transform_5, window_bounds = array<i64: 1, 128>}, {pipeline_mode = #tpu.pipeline_mode<synchronous>, transform_indices = @transform_6, window_bounds = array<i64: 1, 128>}, {pipeline_mode = #tpu.pipeline_mode<synchronous>, transform_indices = @transform_7, window_bounds = array<i64: 128, 128>}, {pipeline_mode = #tpu.pipeline_mode<synchronous>, transform_indices = @transform_8, window_bounds = array<i64: 1, 128>}, {pipeline_mode = #tpu.pipeline_mode<synchronous>, transform_indices = @transform_9, window_bounds = array<i64: 1, 128>}, {pipeline_mode = #tpu.pipeline_mode<synchronous>, transform_indices = @transform_10, window_bounds = array<i64: 1, 128>}, {pipeline_mode = #tpu.pipeline_mode<synchronous>, transform_indices = @transform_11, window_bounds = array<i64: 128, 128>}, {pipeline_mode = #tpu.pipeline_mode<synchronous>, transform_indices = @transform_12, window_bounds = array<i64: 1, 128>}, {transform_indices = @transform_13, window_bounds = array<i64: 8, 128>}]} {
    %c0 = arith.constant 0 : index
    %c0_0 = arith.constant 0 : index
    %0 = vector.load %arg1[%c0, %c0_0] : memref<8x128xf32, #tpu.memory_space<vmem>>, vector<8x128xf32>
    %c0_1 = arith.constant 0 : index
    %c0_2 = arith.constant 0 : index
    %1 = vector.load %arg2[%c0_1, %c0_2] : memref<1x128xf32, #tpu.memory_space<vmem>>, vector<1x128xf32>
    %c0_3 = arith.constant 0 : index
    %c0_4 = arith.constant 0 : index
    %2 = vector.load %arg3[%c0_3, %c0_4] : memref<1x128xf32, #tpu.memory_space<vmem>>, vector<1x128xf32>
    %3 = tpu.iota {dimensions = array<i32: 1>} : vector<8x128xi32>
    %c32_i32 = arith.constant 32 : i32
    %4 = vector.broadcast %c32_i32 : i32 to vector<8x128xi32>
    %5 = arith.cmpi slt, %3, %4 : vector<8x128xi32>
    %cst = arith.constant dense<0.000000e+00> : vector<8xf32>
    %6 = vector.multi_reduction <add>, %0, %cst [1] : vector<8x128xf32> to vector<8xf32>
    %7 = vector.shape_cast %6 : vector<8xf32> to vector<8x1xf32>
    %cst_5 = arith.constant 3.125000e-02 : f32
    %8 = vector.broadcast %cst_5 : f32 to vector<8x1xf32>
    %9 = arith.mulf %7, %8 : vector<8x1xf32>
    %10 = vector.broadcast %9 : vector<8x1xf32> to vector<8x128xf32>
    %11 = arith.subf %0, %10 : vector<8x128xf32>
    %cst_6 = arith.constant 0.000000e+00 : f32
    %12 = vector.broadcast %cst_6 : f32 to vector<8x128xf32>
    %13 = arith.select %5, %11, %12 : vector<8x128xi1>, vector<8x128xf32>
    %14 = arith.mulf %13, %13 : vector<8x128xf32>
    %cst_7 = arith.constant dense<0.000000e+00> : vector<8xf32>
    %15 = vector.multi_reduction <add>, %14, %cst_7 [1] : vector<8x128xf32> to vector<8xf32>
    %16 = vector.shape_cast %15 : vector<8xf32> to vector<8x1xf32>
    %cst_8 = arith.constant 3.125000e-02 : f32
    %17 = vector.broadcast %cst_8 : f32 to vector<8x1xf32>
    %18 = arith.mulf %16, %17 : vector<8x1xf32>
    %cst_9 = arith.constant 9.99999974E-6 : f32
    %19 = vector.broadcast %cst_9 : f32 to vector<8x1xf32>
    %20 = arith.addf %18, %19 : vector<8x1xf32>
    %21 = math.rsqrt %20 : vector<8x1xf32>
    %22 = vector.broadcast %21 : vector<8x1xf32> to vector<8x128xf32>
    %23 = arith.mulf %13, %22 : vector<8x128xf32>
    %24 = vector.broadcast %1 : vector<1x128xf32> to vector<8x128xf32>
    %25 = arith.mulf %23, %24 : vector<8x128xf32>
    %26 = vector.broadcast %2 : vector<1x128xf32> to vector<8x128xf32>
    %27 = arith.addf %25, %26 : vector<8x128xf32>
    %c0_10 = arith.constant 0 : index
    %c0_11 = arith.constant 0 : index
    %28 = vector.load %arg4[%c0_10, %c0_11] : memref<128x128xf32, #tpu.memory_space<vmem>>, vector<128x128xf32>
    %c0_12 = arith.constant 0 : index
    %c0_13 = arith.constant 0 : index
    %29 = vector.load %arg5[%c0_12, %c0_13] : memref<1x128xf32, #tpu.memory_space<vmem>>, vector<1x128xf32>
    %cst_14 = arith.constant dense<0.000000e+00> : vector<8x128xf32>
    %30 = tpu.matmul %27, %28, %cst_14 {dimension_numbers = #tpu.dot_dimension_numbers<[1], [0], [0], [1], [0, 0, 1, 1], [], []>} : vector<8x128xf32>, vector<128x128xf32>, vector<8x128xf32> -> vector<8x128xf32>
    %31 = vector.broadcast %29 : vector<1x128xf32> to vector<8x128xf32>
    %32 = arith.addf %30, %31 : vector<8x128xf32>
    %cst_15 = arith.constant 0.000000e+00 : f32
    %33 = vector.broadcast %cst_15 : f32 to vector<8x128xf32>
    %34 = arith.maximumf %32, %33 : vector<8x128xf32>
    %c0_16 = arith.constant 0 : index
    %c0_17 = arith.constant 0 : index
    %35 = vector.load %arg6[%c0_16, %c0_17] : memref<1x128xf32, #tpu.memory_space<vmem>>, vector<1x128xf32>
    %c0_18 = arith.constant 0 : index
    %c0_19 = arith.constant 0 : index
    %36 = vector.load %arg7[%c0_18, %c0_19] : memref<1x128xf32, #tpu.memory_space<vmem>>, vector<1x128xf32>
    %37 = tpu.iota {dimensions = array<i32: 1>} : vector<8x128xi32>
    %c32_i32_20 = arith.constant 32 : i32
    %38 = vector.broadcast %c32_i32_20 : i32 to vector<8x128xi32>
    %39 = arith.cmpi slt, %37, %38 : vector<8x128xi32>
    %cst_21 = arith.constant dense<0.000000e+00> : vector<8xf32>
    %40 = vector.multi_reduction <add>, %34, %cst_21 [1] : vector<8x128xf32> to vector<8xf32>
    %41 = vector.shape_cast %40 : vector<8xf32> to vector<8x1xf32>
    %cst_22 = arith.constant 3.125000e-02 : f32
    %42 = vector.broadcast %cst_22 : f32 to vector<8x1xf32>
    %43 = arith.mulf %41, %42 : vector<8x1xf32>
    %44 = vector.broadcast %43 : vector<8x1xf32> to vector<8x128xf32>
    %45 = arith.subf %34, %44 : vector<8x128xf32>
    %cst_23 = arith.constant 0.000000e+00 : f32
    %46 = vector.broadcast %cst_23 : f32 to vector<8x128xf32>
    %47 = arith.select %39, %45, %46 : vector<8x128xi1>, vector<8x128xf32>
    %48 = arith.mulf %47, %47 : vector<8x128xf32>
    %cst_24 = arith.constant dense<0.000000e+00> : vector<8xf32>
    %49 = vector.multi_reduction <add>, %48, %cst_24 [1] : vector<8x128xf32> to vector<8xf32>
    %50 = vector.shape_cast %49 : vector<8xf32> to vector<8x1xf32>
    %cst_25 = arith.constant 3.125000e-02 : f32
    %51 = vector.broadcast %cst_25 : f32 to vector<8x1xf32>
    %52 = arith.mulf %50, %51 : vector<8x1xf32>
    %cst_26 = arith.constant 9.99999974E-6 : f32
    %53 = vector.broadcast %cst_26 : f32 to vector<8x1xf32>
    %54 = arith.addf %52, %53 : vector<8x1xf32>
    %55 = math.rsqrt %54 : vector<8x1xf32>
    %56 = vector.broadcast %55 : vector<8x1xf32> to vector<8x128xf32>
    %57 = arith.mulf %47, %56 : vector<8x128xf32>
    %58 = vector.broadcast %35 : vector<1x128xf32> to vector<8x128xf32>
    %59 = arith.mulf %57, %58 : vector<8x128xf32>
    %60 = vector.broadcast %36 : vector<1x128xf32> to vector<8x128xf32>
    %61 = arith.addf %59, %60 : vector<8x128xf32>
    %c0_27 = arith.constant 0 : index
    %c0_28 = arith.constant 0 : index
    %62 = vector.load %arg8[%c0_27, %c0_28] : memref<128x128xf32, #tpu.memory_space<vmem>>, vector<128x128xf32>
    %c0_29 = arith.constant 0 : index
    %c0_30 = arith.constant 0 : index
    %63 = vector.load %arg9[%c0_29, %c0_30] : memref<1x128xf32, #tpu.memory_space<vmem>>, vector<1x128xf32>
    %cst_31 = arith.constant dense<0.000000e+00> : vector<8x128xf32>
    %64 = tpu.matmul %61, %62, %cst_31 {dimension_numbers = #tpu.dot_dimension_numbers<[1], [0], [0], [1], [0, 0, 1, 1], [], []>} : vector<8x128xf32>, vector<128x128xf32>, vector<8x128xf32> -> vector<8x128xf32>
    %65 = vector.broadcast %63 : vector<1x128xf32> to vector<8x128xf32>
    %66 = arith.addf %64, %65 : vector<8x128xf32>
    %cst_32 = arith.constant 0.000000e+00 : f32
    %67 = vector.broadcast %cst_32 : f32 to vector<8x128xf32>
    %68 = arith.maximumf %66, %67 : vector<8x128xf32>
    %c0_33 = arith.constant 0 : index
    %c0_34 = arith.constant 0 : index
    %69 = vector.load %arg10[%c0_33, %c0_34] : memref<1x128xf32, #tpu.memory_space<vmem>>, vector<1x128xf32>
    %c0_35 = arith.constant 0 : index
    %c0_36 = arith.constant 0 : index
    %70 = vector.load %arg11[%c0_35, %c0_36] : memref<1x128xf32, #tpu.memory_space<vmem>>, vector<1x128xf32>
    %71 = tpu.iota {dimensions = array<i32: 1>} : vector<8x128xi32>
    %c32_i32_37 = arith.constant 32 : i32
    %72 = vector.broadcast %c32_i32_37 : i32 to vector<8x128xi32>
    %73 = arith.cmpi slt, %71, %72 : vector<8x128xi32>
    %cst_38 = arith.constant dense<0.000000e+00> : vector<8xf32>
    %74 = vector.multi_reduction <add>, %68, %cst_38 [1] : vector<8x128xf32> to vector<8xf32>
    %75 = vector.shape_cast %74 : vector<8xf32> to vector<8x1xf32>
    %cst_39 = arith.constant 3.125000e-02 : f32
    %76 = vector.broadcast %cst_39 : f32 to vector<8x1xf32>
    %77 = arith.mulf %75, %76 : vector<8x1xf32>
    %78 = vector.broadcast %77 : vector<8x1xf32> to vector<8x128xf32>
    %79 = arith.subf %68, %78 : vector<8x128xf32>
    %cst_40 = arith.constant 0.000000e+00 : f32
    %80 = vector.broadcast %cst_40 : f32 to vector<8x128xf32>
    %81 = arith.select %73, %79, %80 : vector<8x128xi1>, vector<8x128xf32>
    %82 = arith.mulf %81, %81 : vector<8x128xf32>
    %cst_41 = arith.constant dense<0.000000e+00> : vector<8xf32>
    %83 = vector.multi_reduction <add>, %82, %cst_41 [1] : vector<8x128xf32> to vector<8xf32>
    %84 = vector.shape_cast %83 : vector<8xf32> to vector<8x1xf32>
    %cst_42 = arith.constant 3.125000e-02 : f32
    %85 = vector.broadcast %cst_42 : f32 to vector<8x1xf32>
    %86 = arith.mulf %84, %85 : vector<8x1xf32>
    %cst_43 = arith.constant 9.99999974E-6 : f32
    %87 = vector.broadcast %cst_43 : f32 to vector<8x1xf32>
    %88 = arith.addf %86, %87 : vector<8x1xf32>
    %89 = math.rsqrt %88 : vector<8x1xf32>
    %90 = vector.broadcast %89 : vector<8x1xf32> to vector<8x128xf32>
    %91 = arith.mulf %81, %90 : vector<8x128xf32>
    %92 = vector.broadcast %69 : vector<1x128xf32> to vector<8x128xf32>
    %93 = arith.mulf %91, %92 : vector<8x128xf32>
    %94 = vector.broadcast %70 : vector<1x128xf32> to vector<8x128xf32>
    %95 = arith.addf %93, %94 : vector<8x128xf32>
    %c0_44 = arith.constant 0 : index
    %c0_45 = arith.constant 0 : index
    %96 = vector.load %arg12[%c0_44, %c0_45] : memref<128x128xf32, #tpu.memory_space<vmem>>, vector<128x128xf32>
    %c0_46 = arith.constant 0 : index
    %c0_47 = arith.constant 0 : index
    %97 = vector.load %arg13[%c0_46, %c0_47] : memref<1x128xf32, #tpu.memory_space<vmem>>, vector<1x128xf32>
    %cst_48 = arith.constant dense<0.000000e+00> : vector<8x128xf32>
    %98 = tpu.matmul %95, %96, %cst_48 {dimension_numbers = #tpu.dot_dimension_numbers<[1], [0], [0], [1], [0, 0, 1, 1], [], []>} : vector<8x128xf32>, vector<128x128xf32>, vector<8x128xf32> -> vector<8x128xf32>
    %99 = vector.broadcast %97 : vector<1x128xf32> to vector<8x128xf32>
    %100 = arith.addf %98, %99 : vector<8x128xf32>
    %c0_49 = arith.constant 0 : index
    %c0_50 = arith.constant 0 : index
    %101 = vector.load %arg14[%c0_49, %c0_50] : memref<8x128xf32, #tpu.memory_space<vmem>>, vector<8x128xf32>
    tpu.vector_store %arg14[%c0_49, %c0_50], %100 {strides = array<i32>} : memref<8x128xf32, #tpu.memory_space<vmem>>, vector<8x128xf32>,
    return
  }
  func.func @transform_0(%arg0: i32) -> (i32, i32) {
    %c0_i32 = arith.constant 0 : i32
    %c0_i32_0 = arith.constant 0 : i32
    return %arg0, %c0_i32 : i32, i32
  }
  func.func @transform_1(%arg0: i32) -> (i32, i32) {
    %c0_i32 = arith.constant 0 : i32
    %c0_i32_0 = arith.constant 0 : i32
    %c0_i32_1 = arith.constant 0 : i32
    return %c0_i32, %c0_i32_0 : i32, i32
  }
  func.func @transform_2(%arg0: i32) -> (i32, i32) {
    %c0_i32 = arith.constant 0 : i32
    %c0_i32_0 = arith.constant 0 : i32
    %c0_i32_1 = arith.constant 0 : i32
    return %c0_i32, %c0_i32_0 : i32, i32
  }
  func.func @transform_3(%arg0: i32) -> (i32, i32) {
    %c0_i32 = arith.constant 0 : i32
    %c0_i32_0 = arith.constant 0 : i32
    %c0_i32_1 = arith.constant 0 : i32
    return %c0_i32, %c0_i32_0 : i32, i32
  }
  func.func @transform_4(%arg0: i32) -> (i32, i32) {
    %c0_i32 = arith.constant 0 : i32
    %c0_i32_0 = arith.constant 0 : i32
    %c0_i32_1 = arith.constant 0 : i32
    return %c0_i32, %c0_i32_0 : i32, i32
  }
  func.func @transform_5(%arg0: i32) -> (i32, i32) {
    %c0_i32 = arith.constant 0 : i32
    %c0_i32_0 = arith.constant 0 : i32
    %c0_i32_1 = arith.constant 0 : i32
    return %c0_i32, %c0_i32_0 : i32, i32
  }
  func.func @transform_6(%arg0: i32) -> (i32, i32) {
    %c0_i32 = arith.constant 0 : i32
    %c0_i32_0 = arith.constant 0 : i32
    %c0_i32_1 = arith.constant 0 : i32
    return %c0_i32, %c0_i32_0 : i32, i32
  }
  func.func @transform_7(%arg0: i32) -> (i32, i32) {
    %c0_i32 = arith.constant 0 : i32
    %c0_i32_0 = arith.constant 0 : i32
    %c0_i32_1 = arith.constant 0 : i32
    return %c0_i32, %c0_i32_0 : i32, i32
  }
  func.func @transform_8(%arg0: i32) -> (i32, i32) {
    %c0_i32 = arith.constant 0 : i32
    %c0_i32_0 = arith.constant 0 : i32
    %c0_i32_1 = arith.constant 0 : i32
    return %c0_i32, %c0_i32_0 : i32, i32
  }
  func.func @transform_9(%arg0: i32) -> (i32, i32) {
    %c0_i32 = arith.constant 0 : i32
    %c0_i32_0 = arith.constant 0 : i32
    %c0_i32_1 = arith.constant 0 : i32
    return %c0_i32, %c0_i32_0 : i32, i32
  }
  func.func @transform_10(%arg0: i32) -> (i32, i32) {
    %c0_i32 = arith.constant 0 : i32
    %c0_i32_0 = arith.constant 0 : i32
    %c0_i32_1 = arith.constant 0 : i32
    return %c0_i32, %c0_i32_0 : i32, i32
  }
  func.func @transform_11(%arg0: i32) -> (i32, i32) {
    %c0_i32 = arith.constant 0 : i32
    %c0_i32_0 = arith.constant 0 : i32
    %c0_i32_1 = arith.constant 0 : i32
    return %c0_i32, %c0_i32_0 : i32, i32
  }
  func.func @transform_12(%arg0: i32) -> (i32, i32) {
    %c0_i32 = arith.constant 0 : i32
    %c0_i32_0 = arith.constant 0 : i32
    %c0_i32_1 = arith.constant 0 : i32
    return %c0_i32, %c0_i32_0 : i32, i32
  }
  func.func @transform_13(%arg0: i32) -> (i32, i32) {
    %c0_i32 = arith.constant 0 : i32
    %c0_i32_0 = arith.constant 0 : i32
    return %arg0, %c0_i32 : i32, i32
  }
}

</mosaic_0001>

<bundles_post_ra>
// kernel: tpu_custom_call.1
= control target key start
LH: loop header
LB: loop body
LE: loop exit
PB: predicated region body
PF: predicated region fallthrough
CT: control target
= control target key end

     0   :  { %18 = vsyncpa [#allocation3], 0  ;;  %s1068_s0 = inlined_call_operand.hbm [shape: f32[8,128], index: 0, kind: input, shape index: {}]   ;;  %s1069_s1 = inlined_call_operand.vmem [shape: f32[1,128], index: 1, kind: input, shape index: {}]   ;;  %s1070_s2 = inlined_call_operand.vmem [shape: f32[1,128], index: 2, kind: input, shape index: {}]   ;;  %s1071_s3 = inlined_call_operand.hbm [shape: f32[128,128], index: 3, kind: input, shape index: {}]   ;;  %s1072_s4 = inlined_call_operand.vmem [shape: f32[1,128], index: 4, kind: input, shape index: {}]   ;;  %s1073_s5 = inlined_call_operand.vmem [shape: f32[1,128], index: 5, kind: input, shape index: {}]   ;;  %s1074_s6 = inlined_call_operand.vmem [shape: f32[1,128], index: 6, kind: input, shape index: {}]   ;;  %s1075_s7 = inlined_call_operand.hbm [shape: f32[128,128], index: 7, kind: input, shape index: {}]   ;;  %s1076_s8 = inlined_call_operand.vmem [shape: f32[1,128], index: 8, kind: input, shape index: {}]   ;;  %s1077_s9 = inlined_call_operand.vmem [shape: f32[1,128], index: 9, kind: input, shape index: {}]   ;;  %s1078_s10 = inlined_call_operand.vmem [shape: f32[1,128], index: 10, kind: input, shape index: {}]   ;;  %s1079_s11 = inlined_call_operand.hbm [shape: f32[128,128], index: 11, kind: input, shape index: {}]   ;;  %s1080_s12 = inlined_call_operand.vmem [shape: f32[1,128], index: 12, kind: input, shape index: {}]   ;;  %s1081_s13 = inlined_call_operand.hbm [shape: f32[8,128], index: 13, kind: output, shape index: {}]  }
   0x1   :  { %19 = vsyncpa [#allocation6], 0 }
   0x2   :  { %20 = vsyncpa [#allocation9], 0 }
   0x3   :  { %21 = vsyncpa [#allocation4], 0  ;;  %s856_s25 = smov [#allocation5]   ;;  %s738_s29 = scalar_lea.hbm %s1071_s3, 2048 }
   0x4   :  { %s41_s26 = sshll.u32 %s856_s25, 4  ;;  %p739_p0 = scmp.ne.s32.totalorder %s1071_s3, %s738_s29  ;;  %s42_s26 = int_to_ptr.vmem [resolvable:$true] %s41_s26 }
   0x5   :  { %p742_p1 = scmp.lt.u32.totalorder %s738_s29, %s1071_s3 }
   0x7   :  { %p744_p2 = pnand %p742_p1, %p739_p0 }
   0x9   :  { %747 = shalt.err (!%p744_p2)
}
   0xa   :  { %s748_s17 = scalar_lea.vmem %s42_s26, 2048  ;;  %p753_p4 = scmp.lt.s32.totalorder %s42_s26, %s42_s26 }
   0xb   :  { %p749_p3 = scmp.ne.s32.totalorder %s42_s26, %s748_s17  ;;  %p754_p5 = scmp.lt.s32.totalorder %s748_s17, %s748_s17 }
   0xd   :  { %p755_p6 = por %p754_p5, %p753_p4 }
   0xf   :  { %p756_p7 = pnand %p755_p6, %p749_p3 }
  0x11   :  { %759 = shalt.err (!%p756_p7)
}
  0x12   :  { %s857_s18 = smov 128   ;;  %s858_s19 = smov 8  }
  0x13   :  { %47 = dma.hbm_to_vmem [thread:$0]  %s1071_s3, 2048, %s42_s26, [#allocation6], %s857_s18, %s857_s18, %s858_s19  }
  0x14   :  { %s859_s22 = smov [#allocation2]   ;;  %s860_s24 = smov [#allocation7]  }
  0x15   :  { %s28_s23 = sshll.u32 %s859_s22, 4  ;;  %s59_s25 = sshll.u32 %s860_s24, 4  ;;  %s29_s23 = int_to_ptr.vmem [resolvable:$true] %s28_s23  ;;  %s60_s25 = int_to_ptr.vmem [resolvable:$true] %s59_s25 }
  0x16   :  { %s760_s29 = scalar_lea.hbm %s1068_s0, 128 }
  0x17   :  { %p761_p8 = scmp.ne.s32.totalorder %s1068_s0, %s760_s29  ;;  %p764_p9 = scmp.lt.u32.totalorder %s760_s29, %s1068_s0 }
  0x19   :  { %p766_p10 = pnand %p764_p9, %p761_p8 }
  0x1b   :  { %769 = shalt.err (!%p766_p10)
}
  0x1c   :  { %s770_s3 = scalar_lea.vmem %s29_s23, 128  ;;  %p775_p12 = scmp.lt.s32.totalorder %s29_s23, %s29_s23 }
  0x1d   :  { %p771_p11 = scmp.ne.s32.totalorder %s29_s23, %s770_s3  ;;  %p776_p13 = scmp.lt.s32.totalorder %s770_s3, %s770_s3 }
  0x1f   :  { %p777_p0 = por %p776_p13, %p775_p12 }
  0x21   :  { %p778_p1 = pnand %p777_p0, %p771_p11 }
  0x23   :  { %781 = shalt.err (!%p778_p1)
}
  0x24   :  { %31 = dma.hbm_to_vmem [thread:$0]  %s1068_s0, 128, %s29_s23, [#allocation3]  }
  0x25   :  { %s782_s22 = scalar_lea.hbm %s1075_s7, 2048 }
  0x26   :  { %p783_p2 = scmp.ne.s32.totalorder %s1075_s7, %s782_s22  ;;  %p786_p3 = scmp.lt.u32.totalorder %s782_s22, %s1075_s7 }
  0x28   :  { %p788_p4 = pnand %p786_p3, %p783_p2 }
  0x2a   :  { %791 = shalt.err (!%p788_p4)
}
  0x2b   :  { %s792_s30 = scalar_lea.vmem %s60_s25, 2048  ;;  %p797_p6 = scmp.lt.s32.totalorder %s60_s25, %s60_s25 }
  0x2c   :  { %p793_p5 = scmp.ne.s32.totalorder %s60_s25, %s792_s30  ;;  %p798_p7 = scmp.lt.s32.totalorder %s792_s30, %s792_s30 }
  0x2e   :  { %p799_p8 = por %p798_p7, %p797_p6 }
  0x30   :  { %p800_p9 = pnand %p799_p8, %p793_p5 }
  0x32   :  { %803 = shalt.err (!%p800_p9)
}
  0x33   :  { %65 = dma.hbm_to_vmem [thread:$0]  %s1075_s7, 2048, %s60_s25, [#allocation6], %s857_s18, %s857_s18, %s858_s19  }
  0x34   :  { %s861_s14 = smov [#allocation8]   ;;  %s804_s26 = scalar_lea.hbm %s1079_s11, 2048 }
  0x35   :  { %s77_s15 = sshll.u32 %s861_s14, 4  ;;  %p805_p10 = scmp.ne.s32.totalorder %s1079_s11, %s804_s26  ;;  %s78_s15 = int_to_ptr.vmem [resolvable:$true] %s77_s15 }
  0x36   :  { %p808_p11 = scmp.lt.u32.totalorder %s804_s26, %s1079_s11 }
  0x38   :  { %p810_p12 = pnand %p808_p11, %p805_p10 }
  0x3a   :  { %813 = shalt.err (!%p810_p12)
}
  0x3b   :  { %s814_s24 = scalar_lea.vmem %s78_s15, 2048  ;;  %p819_p0 = scmp.lt.s32.totalorder %s78_s15, %s78_s15 }
  0x3c   :  { %p815_p13 = scmp.ne.s32.totalorder %s78_s15, %s814_s24  ;;  %p820_p1 = scmp.lt.s32.totalorder %s814_s24, %s814_s24 }
  0x3e   :  { %p821_p2 = por %p820_p1, %p819_p0 }
  0x40   :  { %p822_p3 = pnand %p821_p2, %p815_p13 }
  0x42   :  { %825 = shalt.err (!%p822_p3)
}
  0x43   :  { %83 = dma.hbm_to_vmem [thread:$0]  %s1079_s11, 2048, %s78_s15, [#allocation9], %s857_s18, %s857_s18, %s858_s19  }
  0x44   :  { %848 = dma.done.wait [#allocation3], 128  }
  0x45   :  { %849 = vsyncadd [#allocation3], 4294967168 }
  0x46   :  { %850 = dma.done.wait [#allocation6], 4096  }
  0x47   :  { %851 = vsyncadd [#allocation6], 4294963200 }
  0x48   :  { %852 = dma.done.wait [#allocation9], 2048  }
  0x49   :  { %853 = vsyncadd [#allocation9], 4294965248  ;;  %v98_v0 = vld [vmem:[#allocation2] sm:$0xff]  ;;  %v130_v1 = vld [vmem:[#allocation5] sm:$0xff]  ;;  %v862_v4 = vmov 0.0|0.0   ;;  %v101_v11 = vlaneseq  ;;  %vm863_vm1 = vmmov 0  }
  0x4a   :  { %104 = vadd.xlane.f32.xlu0 %v98_v0  ;;  %v131_v2 = vld [vmem:[#allocation5 + $0x8] sm:$0xff]  ;;  %v132_v3 = vld [vmem:[#allocation5 + $0x10] sm:$0xff]  ;;  %650 = vmatprep.subr.bf16.mxu0 %v862_v4  ;;  %v133_v6 = vld [vmem:[#allocation5 + $0x18] sm:$0xff]  ;;  %v864_v26 = vmov 0.0   ;;  %s865_s3 = smov [#allocation10]  }
  0x4b   :  { %v651_v5 = vpack.c.bf16 %v131_v2, %v130_v1  ;;  %674 = vmatprep.subr.bf16.mxu1 %v862_v4  ;;  %v654_v7 = vpack.c.bf16 %v133_v6, %v132_v3  ;;  %v134_v8 = vld [vmem:[#allocation5 + $0x20] sm:$0xff]  ;;  %v135_v9 = vld [vmem:[#allocation5 + $0x28] sm:$0xff]  ;;  %v998_v12 = vand.u32 127, %v101_v11  ;;  %v136_v18 = vld [vmem:[#allocation5 + $0x30] sm:$0xff]  ;;  %577 = vmatprep.mubr.msk.f32.mxu0 %vm863_vm1, %v864_v26  ;;  %s474_s26 = sshll.u32 %s865_s3, 4  ;;  %s475_s26 = int_to_ptr.vmem [resolvable:$true] %s474_s26 }
  0x4c   :  { %v657_v10 = vpack.c.bf16 %v135_v9, %v134_v8  ;;  %v137_v19 = vld [vmem:[#allocation5 + $0x38] sm:$0xff]  ;;  %v138_v21 = vld [vmem:[#allocation5 + $0x40] sm:$0xff]  ;;  %v139_v22 = vld [vmem:[#allocation5 + $0x48] sm:$0xff]  ;;  %612 = vmatprep.mubr.msk.f32.mxu1 %vm863_vm1, %v864_v26  ;;  %p831_p5 = scmp.lt.s32.totalorder %s475_s26, %s475_s26 }
  0x4d   :  { %652 = vmatpush3.bf16.msra.mxu0 %v651_v5  ;;  %vm103_vm0 = vcmp.lt.s32.totalorder %v998_v12, 32  ;;  %v660_v20 = vpack.c.bf16 %v137_v19, %v136_v18  ;;  %v663_v23 = vpack.c.bf16 %v139_v22, %v138_v21  ;;  %v140_v24 = vld [vmem:[#allocation5 + $0x50] sm:$0xff]  ;;  %v141_v25 = vld [vmem:[#allocation5 + $0x58] sm:$0xff]  ;;  %v142_v28 = vld [vmem:[#allocation5 + $0x60] sm:$0xff] }
  0x4e   :  { %653 = vmatprep.subr.bf16.mxu0 %v862_v4  ;;  %v666_v27 = vpack.c.bf16 %v141_v25, %v140_v24  ;;  %v143_v29 = vld [vmem:[#allocation5 + $0x68] sm:$0xff]  ;;  %v144_v31 = vld [vmem:[#allocation5 + $0x70] sm:$0xff]  ;;  %v145_v32 = vld [vmem:[#allocation5 + $0x78] sm:$0xff] }
  0x4f   :  { %v669_v30 = vpack.c.bf16 %v143_v29, %v142_v28  ;;  %v672_v33 = vpack.c.bf16 %v145_v32, %v144_v31  ;;  %v485_v38 = vld [vmem:[%s1069_s1] ss:$0 sm:$0xff]  ;;  %v252_v48 = vld [vmem:[#allocation7] sm:$0xff]  ;;  %v253_v49 = vld [vmem:[#allocation7 + $0x8] sm:$0xff] }
  0x50   :  { %v486_v40 = vld [vmem:[%s1070_s2] ss:$0 sm:$0xff]  ;;  %v254_v50 = vld [vmem:[#allocation7 + $0x10] sm:$0xff]  ;;  %v675_v51 = vpack.c.bf16 %v253_v49, %v252_v48  ;;  %v256_v54 = vld [vmem:[#allocation7 + $0x20] sm:$0xff] }
  0x51   :  { %655 = vmatpush3.bf16.msra.mxu0 %v654_v7  ;;  %v487_v43 = vld [vmem:[%s1072_s4] ss:$0 sm:$0xff]  ;;  %v257_v55 = vld [vmem:[#allocation7 + $0x28] sm:$0xff]  ;;  %v258_v62 = vld [vmem:[#allocation7 + $0x30] sm:$0xff] }
  0x52   :  { %656 = vmatprep.subr.bf16.mxu0 %v862_v4  ;;  %v255_v52 = vld [vmem:[#allocation7 + $0x18] sm:$0xff]  ;;  %676 = vmatpush3.bf16.msra.mxu1 %v675_v51  ;;  %v681_v56 = vpack.c.bf16 %v257_v55, %v256_v54  ;;  %v260_v1 = vld [vmem:[#allocation7 + $0x40] sm:$0xff]  ;;  %v261_v2 = vld [vmem:[#allocation7 + $0x48] sm:$0xff] }
  0x53   :  { %v678_v53 = vpack.c.bf16 %v255_v52, %v254_v50  ;;  %677 = vmatprep.subr.bf16.mxu1 %v862_v4  ;;  %v259_v63 = vld [vmem:[#allocation7 + $0x38] sm:$0xff]  ;;  %v687_v3 = vpack.c.bf16 %v261_v2, %v260_v1  ;;  %v262_v5 = vld [vmem:[#allocation7 + $0x50] sm:$0xff]  ;;  %v264_v8 = vld [vmem:[#allocation7 + $0x60] sm:$0xff] }
  0x54   :  { %v263_v6 = vld [vmem:[#allocation7 + $0x58] sm:$0xff]  ;;  %v265_v9 = vld [vmem:[#allocation7 + $0x68] sm:$0xff]  ;;  %v266_v11 = vld [vmem:[#allocation7 + $0x70] sm:$0xff] }
  0x55   :  { %658 = vmatpush3.bf16.msra.mxu0 %v657_v10  ;;  %v690_v7 = vpack.c.bf16 %v263_v6, %v262_v5  ;;  %v693_v10 = vpack.c.bf16 %v265_v9, %v264_v8  ;;  %v488_v19 = vld [vmem:[%s1073_s5] ss:$0 sm:$0xff]  ;;  %v374_v29 = vld [vmem:[#allocation8] sm:$0xff]  ;;  %v376_v31 = vld [vmem:[#allocation8 + $0x10] sm:$0xff] }
  0x56   :  { %659 = vmatprep.subr.bf16.mxu0 %v862_v4  ;;  %679 = vmatpush3.bf16.msra.mxu1 %v678_v53  ;;  %v489_v21 = vld [vmem:[%s1074_s6] ss:$0 sm:$0xff]  ;;  %v384_v49 = vld [vmem:[#allocation8 + $0x50] sm:$0xff]  ;;  %v386_v52 = vld [vmem:[#allocation8 + $0x60] sm:$0xff] }
  0x57   :  { %680 = vmatprep.subr.bf16.mxu1 %v862_v4  ;;  %v490_v24 = vld [vmem:[%s1076_s8] ss:$0 sm:$0xff]  ;;  %v387_v12 = vld [vmem:[#allocation8 + $0x68] sm:$0xff]  ;;  %v388_v54 = vld [vmem:[#allocation8 + $0x70] sm:$0xff] }
  0x58   :  { %v385_v50 = vld [vmem:[#allocation8 + $0x58] sm:$0xff]  ;;  %v717_v53 = vpack.c.bf16 %v387_v12, %v386_v52 }
  0x59   :  { %661 = vmatpush3.bf16.msra.mxu0 %v660_v20  ;;  %v714_v51 = vpack.c.bf16 %v385_v50, %v384_v49  ;;  %v389_v55 = vld [vmem:[#allocation8 + $0x78] sm:$0xff] }
  0x5a   :  { %662 = vmatprep.subr.bf16.mxu0 %v862_v4  ;;  %682 = vmatpush3.bf16.msra.mxu1 %v681_v56  ;;  %v720_v56 = vpack.c.bf16 %v389_v55, %v388_v54 }
  0x5b   :  { %683 = vmatprep.subr.bf16.mxu1 %v862_v4 }
  0x5d   :  { %664 = vmatpush3.bf16.msra.mxu0 %v663_v23 }
  0x5e   :  { %665 = vmatprep.subr.bf16.mxu0 %v862_v4 }
  0x61   :  { %667 = vmatpush3.bf16.msra.mxu0 %v666_v27 }
  0x62   :  { %668 = vmatprep.subr.bf16.mxu0 %v862_v4 }
  0x65   :  { %670 = vmatpush3.bf16.msra.mxu0 %v669_v30  ;;  %v375_v30 = vld [vmem:[#allocation8 + $0x8] sm:$0xff] }
  0x66   :  { %671 = vmatprep.subr.bf16.mxu0 %v862_v4  ;;  %v699_v32 = vpack.c.bf16 %v375_v30, %v374_v29 }
  0x69   :  { %673 = vmatpush3.bf16.msra.mxu0 %v672_v33  ;;  %v377_v33 = vld [vmem:[#allocation8 + $0x18] sm:$0xff] }
  0x6a   :  { %698 = vmatprep.subr.bf16.mxu0 %v862_v4 }
  0xd7   :  { %v105_v13 = vpop.xlane.xlu0 %104 }
  0xd8   :  { %v106_v14 = vmul.f32 0.03125, %v105_v13  ;;  %v267_v13 = vld [vmem:[#allocation7 + $0x78] sm:$0xff] }
  0xda   :  { %v107_v15 = vsub.f32 %v98_v0, %v106_v14  ;;  %v684_v0 = vpack.c.bf16 %v259_v63, %v258_v62  ;;  %v696_v14 = vpack.c.bf16 %v267_v13, %v266_v11  ;;  %v492_v63 = vld [vmem:[%s1078_s10] ss:$0 sm:$0xff] }
  0xdc   :  { %v108_v16 = vsel %vm103_vm0, %v107_v15, 0.0  ;;  %685 = vmatpush3.bf16.msra.mxu1 %v684_v0 }
  0xdd   :  { %v109_v17 = vmul.f32 %v108_v16, %v108_v16  ;;  %686 = vmatprep.subr.bf16.mxu1 %v862_v4 }
  0xdf   :  { %110 = vadd.xlane.f32.xlu0 %v109_v17 }
  0xe0   :  { %688 = vmatpush3.bf16.msra.mxu1 %v687_v3 }
  0xe1   :  { %689 = vmatprep.subr.bf16.mxu1 %v862_v4 }
  0xe4   :  { %691 = vmatpush3.bf16.msra.mxu1 %v690_v7 }
  0xe5   :  { %692 = vmatprep.subr.bf16.mxu1 %v862_v4 }
  0xe8   :  { %694 = vmatpush3.bf16.msra.mxu1 %v693_v10 }
  0xe9   :  { %695 = vmatprep.subr.bf16.mxu1 %v862_v4 }
  0xec   :  { %697 = vmatpush3.bf16.msra.mxu1 %v696_v14 }
 0x16c   :  { %v111_v34 = vpop.xlane.xlu0 %110 }
 0x16d   :  { %v112_v35 = vmul.f32 0.03125, %v111_v34  ;;  %v702_v34 = vpack.c.bf16 %v377_v33, %v376_v31 }
 0x16f   :  { %v113_v36 = vadd.f32 1e-05, %v112_v35  ;;  %v378_v35 = vld [vmem:[#allocation8 + $0x20] sm:$0xff] }
 0x171   :  { %732 = vrsqrt.f32 %v113_v36  ;;  %v379_v36 = vld [vmem:[#allocation8 + $0x28] sm:$0xff] }
 0x17b   :  { %v733_v37 = vpop.eup %732 }
 0x17c   :  { %v115_v39 = vmul.f32 %v733_v37, %v108_v16  ;;  %v705_v37 = vpack.c.bf16 %v379_v36, %v378_v35 }
 0x17e   :  { %v122_v41 = vmul.f32 %v485_v38, %v115_v39 }
 0x180   :  { %v129_v42 = vadd.f32 %v486_v40, %v122_v41 }
 0x182   :  { %578 = vmatmul.mubr.f32.vlgmr.msra.gmra.mrb[0].mxu0 %v129_v42 }
 0x183   :  { %647 = vmatprep.mubr.msk.f32.mxu0 %vm863_vm1, %v864_v26  ;;  %700 = vmatpush3.bf16.msra.mxu0 %v699_v32 }
 0x184   :  { %701 = vmatprep.subr.bf16.mxu0 %v862_v4 }
 0x187   :  { %703 = vmatpush3.bf16.msra.mxu0 %v702_v34 }
 0x188   :  { %704 = vmatprep.subr.bf16.mxu0 %v862_v4 }
 0x18b   :  { %706 = vmatpush3.bf16.msra.mxu0 %v705_v37 }
 0x18c   :  { %707 = vmatprep.subr.bf16.mxu0 %v862_v4 }
 0x255   :  { %v219_v44 = vpop.f32.mrb[0].mxu0 }
 0x256   :  { %v220_v45 = vadd.f32 %v487_v43, %v219_v44  ;;  %v579_v46 = vpop.f32.mrb[1].mxu0  ;;  %v380_v43 = vld [vmem:[#allocation8 + $0x30] sm:$0xff]  ;;  %v381_v44 = vld [vmem:[#allocation8 + $0x38] sm:$0xff] }
 0x257   :  { %v382_v46 = vld [vmem:[#allocation8 + $0x40] sm:$0xff] }
 0x258   :  { %v223_v47 = vmax.f32 %v220_v45, 0.0  ;;  %v708_v45 = vpack.c.bf16 %v381_v44, %v380_v43 }
 0x25a   :  { %226 = vadd.xlane.f32.xlu1 %v223_v47  ;;  %709 = vmatpush3.bf16.msra.mxu0 %v708_v45 }
 0x25b   :  { %710 = vmatprep.subr.bf16.mxu0 %v862_v4 }
 0x2e7   :  { %v227_v57 = vpop.xlane.xlu1 %226 }
 0x2e8   :  { %v228_v58 = vmul.f32 0.03125, %v227_v57 }
 0x2ea   :  { %v229_v59 = vsub.f32 %v223_v47, %v228_v58  ;;  %v383_v47 = vld [vmem:[#allocation8 + $0x48] sm:$0xff] }
 0x2eb   :  { %v711_v48 = vpack.c.bf16 %v383_v47, %v382_v46 }
 0x2ec   :  { %v230_v60 = vsel %vm103_vm0, %v229_v59, 0.0 }
 0x2ed   :  { %v231_v61 = vmul.f32 %v230_v60, %v230_v60  ;;  %712 = vmatpush3.bf16.msra.mxu0 %v711_v48 }
 0x2ee   :  { %713 = vmatprep.subr.bf16.mxu0 %v862_v4 }
 0x2ef   :  { %232 = vadd.xlane.f32.xlu1 %v231_v61  ;;  %v491_v61 = vld [vmem:[%s1077_s9] ss:$0 sm:$0xff]  ;;  %s826_s9 = scalar_lea.vmem %s475_s26, 128 }
 0x2f0   :  { %p827_p4 = scmp.ne.s32.totalorder %s475_s26, %s826_s9  ;;  %p832_p6 = scmp.lt.s32.totalorder %s826_s9, %s826_s9 }
 0x2f1   :  { %715 = vmatpush3.bf16.msra.mxu0 %v714_v51 }
 0x2f2   :  { %716 = vmatprep.subr.bf16.mxu0 %v862_v4  ;;  %p833_p7 = por %p832_p6, %p831_p5 }
 0x2f4   :  { %p834_p8 = pnand %p833_p7, %p827_p4 }
 0x2f5   :  { %718 = vmatpush3.bf16.msra.mxu0 %v717_v53 }
 0x2f6   :  { %719 = vmatprep.subr.bf16.mxu0 %v862_v4  ;;  %v493_v4 = vld [vmem:[%s1080_s12] ss:$0 sm:$0xff] }
 0x2f9   :  { %721 = vmatpush3.bf16.msra.mxu0 %v720_v56 }
 0x37c   :  { %v233_v15 = vpop.xlane.xlu1 %232 }
 0x37d   :  { %v234_v16 = vmul.f32 0.03125, %v233_v15 }
 0x37f   :  { %v235_v17 = vadd.f32 1e-05, %v234_v16 }
 0x381   :  { %734 = vrsqrt.f32 %v235_v17 }
 0x38b   :  { %v735_v18 = vpop.eup %734 }
 0x38c   :  { %v237_v20 = vmul.f32 %v735_v18, %v230_v60 }
 0x38e   :  { %v244_v22 = vmul.f32 %v488_v19, %v237_v20 }
 0x390   :  { %v251_v23 = vadd.f32 %v489_v21, %v244_v22 }
 0x392   :  { %613 = vmatmul.mubr.f32.vlgmr.msra.gmra.mrb[0].mxu1 %v251_v23 }
 0x465   :  { %v341_v25 = vpop.f32.mrb[0].mxu1 }
 0x466   :  { %v342_v26 = vadd.f32 %v490_v24, %v341_v25  ;;  %v614_v27 = vpop.f32.mrb[1].mxu1 }
 0x468   :  { %v345_v28 = vmax.f32 %v342_v26, 0.0 }
 0x46a   :  { %348 = vadd.xlane.f32.xlu0 %v345_v28 }
 0x4f7   :  { %v349_v38 = vpop.xlane.xlu0 %348 }
 0x4f8   :  { %v350_v39 = vmul.f32 0.03125, %v349_v38 }
 0x4fa   :  { %v351_v40 = vsub.f32 %v345_v28, %v350_v39 }
 0x4fc   :  { %v352_v41 = vsel %vm103_vm0, %v351_v40, 0.0 }
 0x4fd   :  { %v353_v42 = vmul.f32 %v352_v41, %v352_v41 }
 0x4ff   :  { %354 = vadd.xlane.f32.xlu1 %v353_v42 }
 0x58c   :  { %v355_v57 = vpop.xlane.xlu1 %354 }
 0x58d   :  { %v356_v58 = vmul.f32 0.03125, %v355_v57 }
 0x58f   :  { %v357_v59 = vadd.f32 1e-05, %v356_v58 }
 0x591   :  { %736 = vrsqrt.f32 %v357_v59 }
 0x59b   :  { %v737_v60 = vpop.eup %736 }
 0x59c   :  { %v359_v62 = vmul.f32 %v737_v60, %v352_v41 }
 0x59e   :  { %v366_v0 = vmul.f32 %v491_v61, %v359_v62 }
 0x5a0   :  { %v373_v1 = vadd.f32 %v492_v63, %v366_v0 }
 0x5a2   :  { %648 = vmatmul.mubr.f32.vlgmr.msra.gmra.mrb[2].mxu0 %v373_v1 }
 0x675   :  { %v463_v2 = vpop.f32.mrb[2].mxu0 }
 0x676   :  { %v464_v3 = vadd.f32 %v493_v4, %v463_v2  ;;  %v649_v5 = vpop.f32.mrb[3].mxu0 }
 0x678   :  { %467 = vst [vmem:[#allocation10] sm:$0xff] %v464_v3 }
 0x679   :  { %837 = shalt.err (!%p834_p8)
}
 0x67a   :  { %s838_s20 = scalar_lea.hbm %s1081_s13, 128 }
 0x67b   :  { %p839_p9 = scmp.ne.s32.totalorder %s1081_s13, %s838_s20  ;;  %p842_p10 = scmp.lt.u32.totalorder %s838_s20, %s1081_s13 }
 0x67d   :  { %p844_p11 = pnand %p842_p10, %p839_p9 }
 0x67f   :  { %847 = shalt.err (!%p844_p11)
}
 0x680   :  { %477 = dma.vmem_to_hbm [thread:$0]  %s475_s26, 128, %s1081_s13, [#allocation4]  }
 0x681   :  { %854 = dma.done.wait [#allocation4], 128  }
 0x682   :  { %855 = vsyncadd [#allocation4], 4294967168 }
 0x683   :  { %481 = vsyncpa [#allocation3], 1 }
 0x684   :  { %482 = vsyncpa [#allocation6], 1 }
 0x685   :  { %483 = vsyncpa [#allocation9], 1 }
 0x686   :  { %484 = vsyncpa [#allocation4], 1 }

</bundles_post_ra>
